<compile_context>
chip_gen: v7x
topology: tpu7x:2x2x1
jax: 0.10.0
libtpu: 0.0.40
codegen_flags: <defaults>
</compile_context>

<pallas_src>
import functools

import jax
import jax.numpy as jnp
import numpy as np
from jax import lax
from jax.experimental import pallas as pl
from jax.experimental.pallas import tpu as pltpu

LEAKY_SLOPE = 1.0  # nn.LeakyReLU(True) -> negative_slope = True == 1.0 (identity)


def _sft_kernel(x_ref, mask_ref, w1_ref, wd_ref, b1_ref, bd_ref, o_ref, *,
                Wp, Ht, Cmid):
    """One (batch, row-tile) grid step.

    x_ref   : (1, 1, Cpk, (Ht+5)*Wp)  packed & zero-padded x|guide row window
    mask_ref: (1, 1, Lm)              validity mask over the modulated rows
    w1_ref  : (3*Cmid, 9*Cpk)         [enc ; scale ; shift] block-diag weights
    wd_ref  : (Cout, 9*Cmid)          decoder weights in im2col layout
    b1_ref  : (3*Cmid, 1)             [b_enc ; b_scale+1 ; b_shift]
    bd_ref  : (Cout, 1)
    o_ref   : (1, 1, Cout, Ht*Wp)     this tile's output rows (padded width)
    """
    Lm = (Ht + 2) * Wp          # modulated rows incl. 1-row decoder halo
    Lt = Ht * Wp                # this tile's output rows, flattened

    xg = x_ref[0, 0]            # (Cpk, slab)
    offs = [dh * Wp + dw for dh in range(3) for dw in range(3)]

    # ---- stage 1: encoder(x), scale(guide), shift(guide) as ONE matmul ------
    im1 = jnp.concatenate([xg[:, o:o + Lm] for o in offs], axis=0)   # (9*Cpk, Lm)
    s1 = jnp.dot(w1_ref[...], im1,
                 preferred_element_type=jnp.float32) + b1_ref[...]   # (3*Cmid, Lm)

    x_e = s1[0:Cmid]
    if LEAKY_SLOPE != 1.0:      # slope == 1.0 -> identity, elided at trace time
        x_e = jnp.where(x_e > 0, x_e, LEAKY_SLOPE * x_e)

    # x + x*scale + shift == x*(1+scale) + shift ; the "+1" is folded into b1.
    # The mask zeroes padded-width columns and out-of-image halo rows so they
    # act as the decoder conv's zero padding.
    mod = (x_e * s1[Cmid:2 * Cmid] + s1[2 * Cmid:3 * Cmid]) * mask_ref[0]

    # ---- stage 2: decoder conv as ONE matmul over an im2col of `mod` --------
    zcol = jnp.zeros((Cmid, 1), jnp.float32)
    mod_p = jnp.concatenate([zcol, mod, zcol], axis=1)                # (Cmid, Lm+2)
    im2 = jnp.concatenate([mod_p[:, o:o + Lt] for o in offs], axis=0)  # (9*Cmid, Lt)
    y = jnp.dot(wd_ref[...], im2,
                preferred_element_type=jnp.float32) + bd_ref[...]     # (Cout, Lt)

    o_ref[0, 0] = y.astype(o_ref.dtype)   # single lane-dense store


def _pick_row_tile(H, Wp, target_cols=2048):
    """Row-tile height: keep the flat tile width lane-dense (~2048 columns)."""
    return min(H, max(8, -(-target_cols // Wp)))


def sft_forward(x, guide, params, *, row_tile=None):
    """Forward pass of SFT_layer. x, guide: (N, Cin, H, W) float32 NCHW."""
    (w_enc, b_enc, w_scale, b_scale, w_shift, b_shift, w_dec, b_dec) = params
    N, Cin, H, W = x.shape
    Cmid = w_enc.shape[0]
    Cout = w_dec.shape[0]

    Wp = W + 2                        # 1 column of zero padding each side
    Ht = _pick_row_tile(H, Wp) if row_tile is None else row_tile
    Hpad = -(-H // Ht) * Ht           # pad rows up to a multiple of the tile
    n_tiles = Hpad // Ht
    slab_rows = Ht + 5                # rows read per tile (conv halos + slack)
    slab = slab_rows * Wp
    Lm = (Ht + 2) * Wp                # modulated rows incl. decoder halo
    Lt = Ht * Wp
    Cpk = ((2 * Cin + 7) // 8) * 8    # packed x|guide channels, sublane-aligned

    # -- pack x|guide, pad channels/rows, add conv zero padding, and cut the
    #    overlapping per-tile row windows (VMEM then scales with Ht, not H). --
    xg = jnp.concatenate([x, guide], axis=1)
    xg = jnp.pad(xg, ((0, 0), (0, Cpk - 2 * Cin), (0, Hpad - H), (0, 0)))
    xg = jnp.pad(xg, ((0, 0), (0, 0), (2, 3), (1, 1)))      # (N, Cpk, Hpad+5, Wp)
    ridx = jnp.arange(n_tiles)[:, None] * Ht + jnp.arange(slab_rows)[None, :]
    xt = xg[:, :, ridx, :]                                   # (N, Cpk, T, Ht+5, Wp)
    xt = jnp.transpose(xt, (0, 2, 1, 3, 4)).reshape(N, n_tiles, Cpk, slab)

    # -- per-tile validity mask over the modulated features: zero for padded
    #    columns and for rows outside the original image (no in-kernel div/mod).
    p = jnp.arange(Lm)
    mrow = jnp.arange(n_tiles)[:, None] * Ht - 1 + (p // Wp)[None, :]
    mask = ((p % Wp < W)[None, :] & (mrow >= 0) & (mrow < H))
    mask = mask.astype(jnp.float32).reshape(n_tiles, 1, Lm)

    # -- fused stage-1 weight: rows [encoder ; scale ; shift], block-diagonal
    #    over the packed channels (tap t = dh*3+dw, channel c lives at column
    #    t*Cpk + (x: c | guide: Cin+c)).  The "+1" of the modulation is folded
    #    into the scale bias rows. --
    def tap_mat(w, ch_off):
        wt = jnp.transpose(w, (0, 2, 3, 1))                  # (Co, 3, 3, Ci)
        wt = jnp.pad(wt, ((0, 0), (0, 0), (0, 0),
                          (ch_off, Cpk - ch_off - w.shape[1])))
        return wt.reshape(w.shape[0], 9 * Cpk)

    w1 = jnp.concatenate(
        [tap_mat(w_enc, 0), tap_mat(w_scale, Cin), tap_mat(w_shift, Cin)], axis=0)
    b1 = jnp.concatenate([b_enc, b_scale + 1.0, b_shift]).reshape(3 * Cmid, 1)
    wd2 = jnp.transpose(w_dec, (0, 2, 3, 1)).reshape(Cout, 9 * Cmid)
    bd = b_dec.reshape(Cout, 1)

    kern = functools.partial(_sft_kernel, Wp=Wp, Ht=Ht, Cmid=Cmid)

    out = pl.pallas_call(
        kern,
        out_shape=jax.ShapeDtypeStruct((N, n_tiles, Cout, Lt), x.dtype),
        grid_spec=pltpu.PrefetchScalarGridSpec(
            num_scalar_prefetch=0,
            grid=(N, n_tiles),
            in_specs=[
                pl.BlockSpec((1, 1, Cpk, slab), lambda n, i: (n, i, 0, 0)),
                pl.BlockSpec((1, 1, Lm), lambda n, i: (i, 0, 0)),
                pl.BlockSpec((3 * Cmid, 9 * Cpk), lambda n, i: (0, 0)),
                pl.BlockSpec((Cout, 9 * Cmid), lambda n, i: (0, 0)),
                pl.BlockSpec((3 * Cmid, 1), lambda n, i: (0, 0)),
                pl.BlockSpec((Cout, 1), lambda n, i: (0, 0)),
            ],
            out_specs=pl.BlockSpec((1, 1, Cout, Lt), lambda n, i: (n, i, 0, 0)),
        ),
        compiler_params=pltpu.CompilerParams(
            dimension_semantics=("parallel", "parallel"),
            # Per-tile working set is only a few MiB now that blocks are
            # windowed per row tile; 32 MiB is safe on every generation
            # (v7x has 64 MiB/TC physical).
            vmem_limit_bytes=32 * 1024 * 1024,
        ),
    )(xt, mask, w1, wd2, b1, bd)

    # relayout (N, T, Cout, Ht*Wp) -> (N, Cout, H, W) and crop padding.
    out = out.reshape(N, n_tiles, Cout, Ht, Wp)
    out = jnp.transpose(out, (0, 2, 1, 3, 4)).reshape(N, Cout, Hpad, Wp)
    return out[:, :, :H, :W]


def reference_forward(x, guide, params):
    """Pure-JAX reference of the PyTorch SFT_layer forward (for correctness)."""
    (w_enc, b_enc, w_scale, b_scale, w_shift, b_shift, w_dec, b_dec) = params

    def conv(inp, w, b):
        y = lax.conv_general_dilated(
            inp, w, (1, 1), ((1, 1), (1, 1)),
            dimension_numbers=("NCHW", "OIHW", "NCHW"),
            precision=lax.Precision.HIGHEST)
        return y + b[None, :, None, None]

    xe = conv(x, w_enc, b_enc)
    xe = jnp.where(xe > 0, xe, LEAKY_SLOPE * xe)   # literal nn.LeakyReLU(True)
    scale = conv(guide, w_scale, b_scale)
    shift = conv(guide, w_shift, b_shift)
    xm = xe + xe * scale + shift
    return conv(xm, w_dec, b_dec)


if __name__ == "__main__":
    # Shapes consistent with SFT_layer defaults: in_ch=3, inter_ch=32, out_ch=3.
    N, in_ch, inter_ch, out_ch, H, W = 2, 3, 32, 3, 16, 16

    key = jax.random.PRNGKey(0)
    ks = jax.random.split(key, 8)

    x = jax.random.normal(ks[0], (N, in_ch, H, W), dtype=jnp.float32)
    guide = jax.random.normal(ks[1], (N, in_ch, H, W), dtype=jnp.float32)

    def conv_init(k, co, ci):
        kw, kb = jax.random.split(k)
        bound = 1.0 / np.sqrt(ci * 9)
        w = jax.random.uniform(kw, (co, ci, 3, 3), jnp.float32, -bound, bound)
        b = jax.random.uniform(kb, (co,), jnp.float32, -bound, bound)
        return w, b

    w_enc, b_enc = conv_init(ks[2], inter_ch, in_ch)
    w_scale, b_scale = conv_init(ks[3], inter_ch, in_ch)
    w_shift, b_shift = conv_init(ks[4], inter_ch, in_ch)
    w_dec, b_dec = conv_init(ks[5], out_ch, inter_ch)
    params = (w_enc, b_enc, w_scale, b_scale, w_shift, b_shift, w_dec, b_dec)

    # row_tile=8 -> 2 row tiles per image, exercising the tiled grid path.
    fwd = jax.jit(functools.partial(sft_forward, row_tile=8))
    out = jax.block_until_ready(fwd(x, guide, params))
    ref = reference_forward(x, guide, params)
    assert out.shape == (N, out_ch, H, W), out.shape
    np.testing.assert_allclose(np.asarray(out), np.asarray(ref), rtol=2e-3, atol=2e-3)

    # Uneven H (not a multiple of the row tile) exercises the row-padding path.
    H2, W2 = 12, 20
    x2 = jax.random.normal(ks[6], (N, in_ch, H2, W2), dtype=jnp.float32)
    g2 = jax.random.normal(ks[7], (N, in_ch, H2, W2), dtype=jnp.float32)
    out2 = jax.block_until_ready(fwd(x2, g2, params))
    ref2 = reference_forward(x2, g2, params)
    assert out2.shape == (N, out_ch, H2, W2), out2.shape
    np.testing.assert_allclose(np.asarray(out2), np.asarray(ref2), rtol=2e-3, atol=2e-3)

    print("KERNEL_OK")
</pallas_src>

<mosaic_0001>
module attributes {stable_mosaic.version = 11 : i64} {
  func.func @_sft_kernel(%arg0: i32, %arg1: i32, %arg2: memref<1x1x8x234xf32, #tpu.memory_space<vmem>>, %arg3: memref<1x1x180xf32, #tpu.memory_space<vmem>>, %arg4: memref<96x72xf32, #tpu.memory_space<vmem>>, %arg5: memref<3x288xf32, #tpu.memory_space<vmem>>, %arg6: memref<96x1xf32, #tpu.memory_space<vmem>>, %arg7: memref<3x1xf32, #tpu.memory_space<vmem>>, %arg8: memref<1x1x3x144xf32, #tpu.memory_space<vmem>>) attributes {dimension_semantics = [#tpu.dimension_semantics<parallel>, #tpu.dimension_semantics<parallel>], iteration_bounds = array<i64: 2, 2>, scalar_prefetch = 0 : i64, scratch_operands = 0 : i64, tpu.core_type = #tpu.core_type<tc>, window_params = [{transform_indices = @transform_0, window_bounds = array<i64: 1, 1, 8, 234>}, {transform_indices = @transform_1, window_bounds = array<i64: 1, 1, 180>}, {pipeline_mode = #tpu.pipeline_mode<synchronous>, transform_indices = @transform_2, window_bounds = array<i64: 96, 72>}, {pipeline_mode = #tpu.pipeline_mode<synchronous>, transform_indices = @transform_3, window_bounds = array<i64: 3, 288>}, {pipeline_mode = #tpu.pipeline_mode<synchronous>, transform_indices = @transform_4, window_bounds = array<i64: 96, 1>}, {pipeline_mode = #tpu.pipeline_mode<synchronous>, transform_indices = @transform_5, window_bounds = array<i64: 3, 1>}, {transform_indices = @transform_6, window_bounds = array<i64: 1, 1, 3, 144>}]} {
    %c0 = arith.constant 0 : index
    %c0_0 = arith.constant 0 : index
    %c0_1 = arith.constant 0 : index
    %c0_2 = arith.constant 0 : index
    %0 = vector.load %arg2[%c0, %c0_0, %c0_1, %c0_2] : memref<1x1x8x234xf32, #tpu.memory_space<vmem>>, vector<1x1x8x234xf32>
    %1 = vector.shape_cast %0 : vector<1x1x8x234xf32> to vector<8x234xf32>
    %2 = vector.extract_strided_slice %1 {offsets = [0, 0], sizes = [8, 180], strides = [1, 1]} : vector<8x234xf32> to vector<8x180xf32>
    %3 = vector.extract_strided_slice %1 {offsets = [0, 1], sizes = [8, 180], strides = [1, 1]} : vector<8x234xf32> to vector<8x180xf32>
    %4 = vector.extract_strided_slice %1 {offsets = [0, 2], sizes = [8, 180], strides = [1, 1]} : vector<8x234xf32> to vector<8x180xf32>
    %5 = vector.extract_strided_slice %1 {offsets = [0, 18], sizes = [8, 180], strides = [1, 1]} : vector<8x234xf32> to vector<8x180xf32>
    %6 = vector.extract_strided_slice %1 {offsets = [0, 19], sizes = [8, 180], strides = [1, 1]} : vector<8x234xf32> to vector<8x180xf32>
    %7 = vector.extract_strided_slice %1 {offsets = [0, 20], sizes = [8, 180], strides = [1, 1]} : vector<8x234xf32> to vector<8x180xf32>
    %8 = vector.extract_strided_slice %1 {offsets = [0, 36], sizes = [8, 180], strides = [1, 1]} : vector<8x234xf32> to vector<8x180xf32>
    %9 = vector.extract_strided_slice %1 {offsets = [0, 37], sizes = [8, 180], strides = [1, 1]} : vector<8x234xf32> to vector<8x180xf32>
    %10 = vector.extract_strided_slice %1 {offsets = [0, 38], sizes = [8, 180], strides = [1, 1]} : vector<8x234xf32> to vector<8x180xf32>
    %11 = tpu.concatenate %2, %3, %4, %5, %6, %7, %8, %9, %10 in 0 : vector<8x180xf32>, vector<8x180xf32>, vector<8x180xf32>, vector<8x180xf32>, vector<8x180xf32>, vector<8x180xf32>, vector<8x180xf32>, vector<8x180xf32>, vector<8x180xf32> -> vector<72x180xf32>
    %c0_3 = arith.constant 0 : index
    %c0_4 = arith.constant 0 : index
    %12 = vector.load %arg4[%c0_3, %c0_4] : memref<96x72xf32, #tpu.memory_space<vmem>>, vector<96x72xf32>
    %cst = arith.constant dense<0.000000e+00> : vector<96x180xf32>
    %13 = tpu.matmul %12, %11, %cst {dimension_numbers = #tpu.dot_dimension_numbers<[1], [0], [0], [1], [0, 0, 1, 1], [], []>} : vector<96x72xf32>, vector<72x180xf32>, vector<96x180xf32> -> vector<96x180xf32>
    %c0_5 = arith.constant 0 : index
    %c0_6 = arith.constant 0 : index
    %14 = vector.load %arg6[%c0_5, %c0_6] : memref<96x1xf32, #tpu.memory_space<vmem>>, vector<96x1xf32>
    %15 = vector.broadcast %14 : vector<96x1xf32> to vector<96x180xf32>
    %16 = arith.addf %13, %15 : vector<96x180xf32>
    %17 = vector.extract_strided_slice %16 {offsets = [0, 0], sizes = [32, 180], strides = [1, 1]} : vector<96x180xf32> to vector<32x180xf32>
    %18 = vector.extract_strided_slice %16 {offsets = [32, 0], sizes = [32, 180], strides = [1, 1]} : vector<96x180xf32> to vector<32x180xf32>
    %19 = arith.mulf %17, %18 : vector<32x180xf32>
    %20 = vector.extract_strided_slice %16 {offsets = [64, 0], sizes = [32, 180], strides = [1, 1]} : vector<96x180xf32> to vector<32x180xf32>
    %21 = arith.addf %19, %20 : vector<32x180xf32>
    %c0_7 = arith.constant 0 : index
    %c0_8 = arith.constant 0 : index
    %c0_9 = arith.constant 0 : index
    %22 = vector.load %arg3[%c0_7, %c0_8, %c0_9] : memref<1x1x180xf32, #tpu.memory_space<vmem>>, vector<1x1x180xf32>
    %23 = vector.shape_cast %22 : vector<1x1x180xf32> to vector<1x180xf32>
    %24 = vector.broadcast %23 : vector<1x180xf32> to vector<32x180xf32>
    %25 = arith.mulf %21, %24 : vector<32x180xf32>
    %cst_10 = arith.constant 0.000000e+00 : f32
    %26 = vector.broadcast %cst_10 : f32 to vector<32x1xf32>
    %27 = tpu.concatenate %26, %25, %26 in 1 : vector<32x1xf32>, vector<32x180xf32>, vector<32x1xf32> -> vector<32x182xf32>
    %28 = vector.extract_strided_slice %27 {offsets = [0, 0], sizes = [32, 144], strides = [1, 1]} : vector<32x182xf32> to vector<32x144xf32>
    %29 = vector.extract_strided_slice %27 {offsets = [0, 1], sizes = [32, 144], strides = [1, 1]} : vector<32x182xf32> to vector<32x144xf32>
    %30 = vector.extract_strided_slice %27 {offsets = [0, 2], sizes = [32, 144], strides = [1, 1]} : vector<32x182xf32> to vector<32x144xf32>
    %31 = vector.extract_strided_slice %27 {offsets = [0, 18], sizes = [32, 144], strides = [1, 1]} : vector<32x182xf32> to vector<32x144xf32>
    %32 = vector.extract_strided_slice %27 {offsets = [0, 19], sizes = [32, 144], strides = [1, 1]} : vector<32x182xf32> to vector<32x144xf32>
    %33 = vector.extract_strided_slice %27 {offsets = [0, 20], sizes = [32, 144], strides = [1, 1]} : vector<32x182xf32> to vector<32x144xf32>
    %34 = vector.extract_strided_slice %27 {offsets = [0, 36], sizes = [32, 144], strides = [1, 1]} : vector<32x182xf32> to vector<32x144xf32>
    %35 = vector.extract_strided_slice %27 {offsets = [0, 37], sizes = [32, 144], strides = [1, 1]} : vector<32x182xf32> to vector<32x144xf32>
    %36 = vector.extract_strided_slice %27 {offsets = [0, 38], sizes = [32, 144], strides = [1, 1]} : vector<32x182xf32> to vector<32x144xf32>
    %37 = tpu.concatenate %28, %29, %30, %31, %32, %33, %34, %35, %36 in 0 : vector<32x144xf32>, vector<32x144xf32>, vector<32x144xf32>, vector<32x144xf32>, vector<32x144xf32>, vector<32x144xf32>, vector<32x144xf32>, vector<32x144xf32>, vector<32x144xf32> -> vector<288x144xf32>
    %c0_11 = arith.constant 0 : index
    %c0_12 = arith.constant 0 : index
    %38 = vector.load %arg5[%c0_11, %c0_12] : memref<3x288xf32, #tpu.memory_space<vmem>>, vector<3x288xf32>
    %cst_13 = arith.constant dense<0.000000e+00> : vector<3x144xf32>
    %39 = tpu.matmul %38, %37, %cst_13 {dimension_numbers = #tpu.dot_dimension_numbers<[1], [0], [0], [1], [0, 0, 1, 1], [], []>} : vector<3x288xf32>, vector<288x144xf32>, vector<3x144xf32> -> vector<3x144xf32>
    %c0_14 = arith.constant 0 : index
    %c0_15 = arith.constant 0 : index
    %40 = vector.load %arg7[%c0_14, %c0_15] : memref<3x1xf32, #tpu.memory_space<vmem>>, vector<3x1xf32>
    %41 = vector.broadcast %40 : vector<3x1xf32> to vector<3x144xf32>
    %42 = arith.addf %39, %41 : vector<3x144xf32>
    %c0_16 = arith.constant 0 : index
    %c0_17 = arith.constant 0 : index
    %c0_18 = arith.constant 0 : index
    %c0_19 = arith.constant 0 : index
    %43 = vector.load %arg8[%c0_16, %c0_17, %c0_18, %c0_19] : memref<1x1x3x144xf32, #tpu.memory_space<vmem>>, vector<1x1x3x144xf32>
    %44 = vector.shape_cast %43 : vector<1x1x3x144xf32> to vector<3x144xf32>
    %45 = vector.shape_cast %42 : vector<3x144xf32> to vector<1x1x3x144xf32>
    tpu.vector_store %arg8[%c0_16, %c0_17, %c0_18, %c0_19], %45 {strides = array<i32>} : memref<1x1x3x144xf32, #tpu.memory_space<vmem>>, vector<1x1x3x144xf32>,
    return
  }
  func.func @transform_0(%arg0: i32, %arg1: i32) -> (i32, i32, i32, i32) {
    %c0_i32 = arith.constant 0 : i32
    %c0_i32_0 = arith.constant 0 : i32
    %c0_i32_1 = arith.constant 0 : i32
    return %arg0, %arg1, %c0_i32, %c0_i32_0 : i32, i32, i32, i32
  }
  func.func @transform_1(%arg0: i32, %arg1: i32) -> (i32, i32, i32) {
    %c0_i32 = arith.constant 0 : i32
    %c0_i32_0 = arith.constant 0 : i32
    %c0_i32_1 = arith.constant 0 : i32
    return %arg1, %c0_i32, %c0_i32_0 : i32, i32, i32
  }
  func.func @transform_2(%arg0: i32, %arg1: i32) -> (i32, i32) {
    %c0_i32 = arith.constant 0 : i32
    %c0_i32_0 = arith.constant 0 : i32
    %c0_i32_1 = arith.constant 0 : i32
    return %c0_i32, %c0_i32_0 : i32, i32
  }
  func.func @transform_3(%arg0: i32, %arg1: i32) -> (i32, i32) {
    %c0_i32 = arith.constant 0 : i32
    %c0_i32_0 = arith.constant 0 : i32
    %c0_i32_1 = arith.constant 0 : i32
    return %c0_i32, %c0_i32_0 : i32, i32
  }
  func.func @transform_4(%arg0: i32, %arg1: i32) -> (i32, i32) {
    %c0_i32 = arith.constant 0 : i32
    %c0_i32_0 = arith.constant 0 : i32
    %c0_i32_1 = arith.constant 0 : i32
    return %c0_i32, %c0_i32_0 : i32, i32
  }
  func.func @transform_5(%arg0: i32, %arg1: i32) -> (i32, i32) {
    %c0_i32 = arith.constant 0 : i32
    %c0_i32_0 = arith.constant 0 : i32
    %c0_i32_1 = arith.constant 0 : i32
    return %c0_i32, %c0_i32_0 : i32, i32
  }
  func.func @transform_6(%arg0: i32, %arg1: i32) -> (i32, i32, i32, i32) {
    %c0_i32 = arith.constant 0 : i32
    %c0_i32_0 = arith.constant 0 : i32
    %c0_i32_1 = arith.constant 0 : i32
    return %arg0, %arg1, %c0_i32, %c0_i32_0 : i32, i32, i32, i32
  }
}

</mosaic_0001>

<bundles_post_ra>
// kernel: sft_forward.1
= control target key start
LH: loop header
LB: loop body
LE: loop exit
PB: predicated region body
PF: predicated region fallthrough
CT: control target
= control target key end

     0   :  { %s1707_s21 = smov 0   ;;  %s1709_s22 = smov 0   ;;  %s2009_s0 = inlined_call_operand.vmem [shape: f32[2,2,8,234], index: 0, kind: input, shape index: {}]   ;;  %s2010_s1 = inlined_call_operand.vmem [shape: f32[2,1,180], index: 1, kind: input, shape index: {}]   ;;  %s2011_s2 = inlined_call_operand.vmem [shape: f32[96,72], index: 2, kind: input, shape index: {}]   ;;  %s2012_s3 = inlined_call_operand.vmem [shape: f32[3,288], index: 3, kind: input, shape index: {}]   ;;  %s2013_s4 = inlined_call_operand.vmem [shape: f32[96,1], index: 4, kind: input, shape index: {}]   ;;  %s2014_s5 = inlined_call_operand.vmem [shape: f32[3,1], index: 5, kind: input, shape index: {}]   ;;  %s2015_s6 = inlined_call_operand.vmem [shape: f32[2,2,3,144], index: 6, kind: output, shape index: {}]  }
   0x1   :  { %s1711_s23 = smov 0   ;;  %s1713_s24 = smov 0  }
   0x2   :  { %s1715_s25 = smov 0  }
   0x3 LB: > { %s25_s26 = sadd.s32 1, %s1651_s23  ;;  %s28_s27 = sadd.s32 1, %s1655_s24  ;;  %s1659_s25 = sphi %s1715_s25, %s16_s25   ;;  %s1655_s24 = sphi %s1713_s24, %s2029_s24   ;;  %s1651_s23 = sphi %s1711_s23, %s2028_s23   ;;  %s1647_s22 = sphi %s1709_s22, %s2027_s22   ;;  %s1643_s21 = sphi %s1707_s21, %s2026_s21  }
   0x4   : > { %p26_p0 = scmp.ge.s32.totalorder %s25_s26, 2  ;;  %p1221_p1 = scmp.ge.s32.totalorder %s1659_s25, 1 }
   0x5   : > { %p241_p2 = scmp.lt.s32.totalorder %s1659_s25, 5 }
   0x6   : > { %s2031_s26 = smov (%p26_p0, %s25_s26), 0  ;;  %s2033_s27 = smov (!%p26_p0, %s28_s27), %s1655_s24 }
   0x7   : > { %p242_p3 = pnand %p1221_p1, %p241_p2  ;;  %p30_p4 = scmp.ge.s32.totalorder %s2033_s27, 2 }
   0x8   : > { %p283_p5 = scmp.lt.s32.totalorder (!%p242_p3), %s1647_s22, 1  ;;  %p285_p6 = scmp.lt.s32.totalorder (!%p242_p3), %s1643_s21, 1  ;;  %v1667_v3 = vmov (!%p242_p3), 0.0   ;;  %v385_v4 = vld [vmem:[%s2013_s4] sm:$0xff] (!%p242_p3)  ;;  %v386_v5 = vld [vmem:[%s2013_s4 + $0x8] sm:$0xff] (!%p242_p3)  ;;  %v1670_v6 = vmov (!%p242_p3), 0  }
   0x9   : > { %s2035_s27 = smov (%p30_p4, %s2033_s27), 0  ;;  %245 = sbr.rel (%p242_p3) target bundleno = 940 (0x3ac), region = 44 }
   0xa   : > { %s1661_s11 = smov (!%p242_p3), 127   ;;  %s1662_s12 = smov (!%p242_p3), 110   ;;  %558 = vmatprep.mubr.f32.mxu0 (!%p242_p3), %v1667_v3  ;;  %1438 = vset.pattern.permute.xlu1 (!%p242_p3), %v1670_v6  ;;  %v389_v7 = vld [vmem:[%s2013_s4 + $0x20] sm:$0xff] (!%p242_p3)  ;;  %v390_v9 = vld [vmem:[%s2013_s4 + $0x28] sm:$0xff] (!%p242_p3)  ;;  %v387_v10 = vld [vmem:[%s2013_s4 + $0x10] sm:$0xff] (!%p242_p3)  ;;  %vm313_vm0 = vcmask (!%p242_p3), 1039360  }
   0xb   : > { %s1663_s13 = smov (!%p242_p3), 126   ;;  %s1664_s14 = smov (!%p242_p3), 109   ;;  %1439 = vset.pattern.permute.xlu0 (!%p242_p3), %v1670_v6  ;;  %v393_v8 = vld [vmem:[%s2013_s4 + $0x40] sm:$0xff] (!%p242_p3)  ;;  %v394_v11 = vld [vmem:[%s2013_s4 + $0x48] sm:$0xff] (!%p242_p3)  ;;  %v391_v12 = vld [vmem:[%s2013_s4 + $0x30] sm:$0xff] (!%p242_p3)  ;;  %vm329_vm1 = vcmask (!%p242_p3), 900096  }
   0xc   : > { %s1665_s15 = smov (!%p242_p3), 108   ;;  %s1666_s16 = smov (!%p242_p3), 92   ;;  %v388_v13 = vld [vmem:[%s2013_s4 + $0x18] sm:$0xff] (!%p242_p3)  ;;  %v395_v14 = vld [vmem:[%s2013_s4 + $0x50] sm:$0xff] (!%p242_p3)  ;;  %vm321_vm2 = vcmask (!%p242_p3), 1031168   ;;  %vm337_vm3 = vcmask (!%p242_p3), 891904  }
   0xd   : > { %s2018_s17 = smov (!%p242_p3), 91   ;;  %s2016_s18 = smov (!%p242_p3), 90   ;;  %v392_v15 = vld [vmem:[%s2013_s4 + $0x38] sm:$0xff] (!%p242_p3)  ;;  %vm345_vm4 = vcmask (!%p242_p3), 883712   ;;  %vm353_vm5 = vcmask (!%p242_p3), 752640   ;;  %vm361_vm6 = vcmask (!%p242_p3), 744448  }
   0xe   : > { %v396_v16 = vld [vmem:[%s2013_s4 + $0x58] sm:$0xff] (!%p242_p3)  ;;  %vm369_vm7 = vcmask (!%p242_p3), 736256   ;;  %v373_v56 = vld [vmem:[%s2011_s2] sm:$0xff] (!%p242_p3)  ;;  %vm457_vm8 = vcmask (!%p242_p3), 588800   ;;  %v374_v57 = vld [vmem:[%s2011_s2 + $0x8] sm:$0xff] (!%p242_p3)  ;;  %vm691_vm9 = vcmask (!%p242_p3), 7168  }
   0xf   : > { %v375_v58 = vld [vmem:[%s2011_s2 + $0x10] sm:$0xff] (!%p242_p3)  ;;  %v376_v59 = vld [vmem:[%s2011_s2 + $0x18] sm:$0xff] (!%p242_p3)  ;;  %v377_v60 = vld [vmem:[%s2011_s2 + $0x20] sm:$0xff] (!%p242_p3)  ;;  %vm708_vm10 = vcmask (!%p242_p3), 433152   ;;  %vm957_vm14 = vcmask (!%p242_p3), 261120   ;;  %vm1106_vm15 = vcmask (!%p242_p3), 1042432  }
  0x10   : > { %s2037_s22 = smov (!%p283_p5, %s1647_s22), 1  ;;  %s2039_s21 = smov (!%p285_p6, %s1643_s21), 1  ;;  %v378_v61 = vld [vmem:[%s2011_s2 + $0x28] sm:$0xff]  ;;  %v379_v62 = vld [vmem:[%s2011_s2 + $0x30] sm:$0xff]  ;;  %v380_v63 = vld [vmem:[%s2011_s2 + $0x38] sm:$0xff] }
  0x11   : > { %s1223_s28 = sshll.u32 %s2037_s22, 2  ;;  %s1222_s29 = sshll.u32 %s2039_s21, 1  ;;  %vm1876_vm11 = vmneg %vm691_vm9 }
  0x12   : > { %s1742_s30 = sadd.s32 %s1223_s28, %s1222_s29  ;;  %s295_s22 = scalar_lea.vmem %s2010_s1, %s1222_s29  ;;  %vm1885_vm12 = vmpackc.low %vm708_vm10, %vm708_vm10 }
  0x13   : > { %s1224_s7 = sshll.u32 %s1742_s30, 3  ;;  %s1671_s21 = smov 1   ;;  %vm1276_vm13 = vmpackc.low %vm1876_vm11, %vm1876_vm11 }
  0x14   : > { %s291_s10 = scalar_lea.vmem %s2009_s0, %s1224_s7  ;;  %s2024_s29 = smov 91  }
  0x15   : > { %v1748_v0 = vld [vmem:[%s291_s10] sm:$0xff]  ;;  %v306_v1 = vld [vmem:[%s291_s10 + $0x8] sm:$0xff] }
  0x16   : > { %v1403_v2 = vpack.i.bf16 %v306_v1, %v1748_v0 }
  0x18   : > { %1404 = vrot.lane.b32.xlu0 %v1403_v2, %s1661_s11  ;;  %1414 = vrot.lane.b32.xlu1 %v1403_v2, %s1662_s12 }
  0x1c   : > { %1409 = vrot.lane.b32.xlu0 %v1403_v2, %s1663_s13  ;;  %1419 = vrot.lane.b32.xlu1 %v1403_v2, %s1664_s14 }
  0x20   : > { %1424 = vrot.lane.b32.xlu0 %v1403_v2, %s1665_s15  ;;  %1429 = vrot.lane.b32.xlu1 %v1403_v2, %s1666_s16 }
  0x24   : > { %1434 = vrot.lane.b32.xlu0 %v1403_v2, %s2018_s17  ;;  %365 = vrot.lane.b32.xlu1 %v1748_v0, %s2016_s18  ;;  %v383_v2 = vld [vmem:[%s2011_s2 + $0x50] sm:$0xff]  ;;  %s1228_s17 = sshll.u32 %s1742_s30, 2 }
  0x25   : > { %s304_s8 = scalar_lea.vmem %s2015_s6, %s1228_s17 }
  0x28   : > { %367 = vrot.lane.b32.xlu0 %v306_v1, %s2016_s18  ;;  %399 = vperm.xlu1 %1438, %v385_v4   ;;  %v384_v4 = vld [vmem:[%s2011_s2 + $0x58] sm:$0xff] }
  0x2c   : > { %404 = vperm.xlu0 %1439, %v386_v5   ;;  %419 = vperm.xlu1 %1438, %v389_v7  }
  0x30   : > { %439 = vperm.xlu0 %1439, %v393_v8   ;;  %424 = vperm.xlu1 %1438, %v390_v9  }
  0x34   : > { %409 = vperm.xlu0 %1439, %v387_v10   ;;  %444 = vperm.xlu1 %1438, %v394_v11  }
  0x38   : > { %429 = vperm.xlu0 %1439, %v391_v12   ;;  %414 = vperm.xlu1 %1438, %v388_v13  }
  0x3c   : > { %449 = vperm.xlu0 %1439, %v395_v14   ;;  %434 = vperm.xlu1 %1438, %v392_v15  }
  0x40   : > { %454 = vperm.xlu1 %1438, %v396_v16  }
  0x8a   : > { %v1405_v17 = vpop.permute.xlu0 %1404  ;;  %v1415_v18 = vpop.permute.xlu1 %1414 }
  0x8b   : > { %v1407_v19 = vunpack.i.h.bf16 %v1405_v17  ;;  %v1406_v20 = vunpack.i.l.bf16 %v1405_v17  ;;  %v1417_v21 = vunpack.i.h.bf16 %v1415_v18  ;;  %v1416_v22 = vunpack.i.l.bf16 %v1415_v18 }
  0x8d   : > { %v1256_v23 = vpack.c.bf16 %v1407_v19, %v306_v1  ;;  %v314_v24 = vsel %vm313_vm0, %v1406_v20, %v1407_v19  ;;  %v330_v28 = vsel %vm329_vm1, %v1416_v22, %v1417_v21  ;;  %v382_v1 = vld [vmem:[%s2011_s2 + $0x48] sm:$0xff] }
  0x8e   : > { %v1410_v25 = vpop.permute.xlu0 %1409  ;;  %v1258_v26 = vpack.c.bf16 %v314_v24, %v1748_v0  ;;  %v1420_v27 = vpop.permute.xlu1 %1419  ;;  %v381_v0 = vld [vmem:[%s2011_s2 + $0x40] sm:$0xff] }
  0x8f   : > { %v1412_v29 = vunpack.i.h.bf16 %v1410_v25  ;;  %v1411_v30 = vunpack.i.l.bf16 %v1410_v25  ;;  %1257 = vmatprep.subr.bf16.mxu0 %v1256_v23  ;;  %v1422_v31 = vunpack.i.h.bf16 %v1420_v27  ;;  %v1421_v32 = vunpack.i.l.bf16 %v1420_v27 }
  0x90   : > { %1259 = vmatpush1.bf16.msra.mxu0 %v1258_v26 }
  0x91   : > { %v1260_v33 = vpack.c.bf16 %v1417_v21, %v1412_v29  ;;  %v322_v34 = vsel %vm321_vm2, %v1411_v30, %v1412_v29  ;;  %v338_v38 = vsel %vm337_vm3, %v1421_v32, %v1422_v31 }
  0x92   : > { %v1425_v35 = vpop.permute.xlu0 %1424  ;;  %v1262_v36 = vpack.c.bf16 %v330_v28, %v322_v34  ;;  %v1430_v37 = vpop.permute.xlu1 %1429 }
  0x93   : > { %v1427_v39 = vunpack.i.h.bf16 %v1425_v35  ;;  %v1426_v40 = vunpack.i.l.bf16 %v1425_v35  ;;  %1261 = vmatprep.subr.bf16.mxu0 %v1260_v33  ;;  %v1432_v41 = vunpack.i.h.bf16 %v1430_v37  ;;  %v1431_v42 = vunpack.i.l.bf16 %v1430_v37 }
  0x94   : > { %1263 = vmatpush1.bf16.msra.mxu0 %v1262_v36 }
  0x95   : > { %v1264_v43 = vpack.c.bf16 %v1427_v39, %v1422_v31  ;;  %v346_v44 = vsel %vm345_vm4, %v1426_v40, %v1427_v39  ;;  %v354_v49 = vsel %vm353_vm5, %v1431_v42, %v1432_v41  ;;  %v649_v31 = vlaneseq }
  0x96   : > { %v1435_v45 = vpop.permute.xlu0 %1434  ;;  %v1266_v46 = vpack.c.bf16 %v346_v44, %v338_v38  ;;  %v366_v53 = vpop.permute.xlu1 %365 }
  0x97   : > { %v1437_v47 = vunpack.i.h.bf16 %v1435_v45  ;;  %v1436_v48 = vunpack.i.l.bf16 %v1435_v45  ;;  %1265 = vmatprep.subr.bf16.mxu0 %v1264_v43  ;;  %v650_v42 = vshrl.u32 %v649_v31, 7 }
  0x98   : > { %1267 = vmatpush1.bf16.msra.mxu0 %v1266_v46 }
  0x99   : > { %v1268_v50 = vpack.c.bf16 %v1437_v47, %v1432_v41  ;;  %v362_v51 = vsel %vm361_vm6, %v1436_v48, %v1437_v47 }
  0x9a   : > { %v1270_v52 = vpack.c.bf16 %v362_v51, %v354_v49  ;;  %v368_v54 = vpop.permute.xlu0 %367 }
  0x9b   : > { %1269 = vmatprep.subr.bf16.mxu0 %v1268_v50  ;;  %v370_v55 = vsel %vm369_vm7, %v366_v53, %v368_v54 }
  0x9c   : > { %1271 = vmatpush1.bf16.msra.mxu0 %v1270_v52  ;;  %v651_v52 = vsub.s32 0, %v650_v42 }
  0x9d   : > { %510 = vmatprep.subr.mxu0 %v368_v54 }
  0xa0   : > { %511 = vmatpush1.msra.mxu0 %v370_v55  ;;  %v647_v55 = vld [vmem:[%s295_s22] sm:$0x3] }
  0xa1   : > { %1229 = vmatmul.mubr.msk.f32.vlgmr.msra.gmra.mrb[0].mxu0 %vm457_vm8, %v373_v56  ;;  %v655_v56 = vsub.s32 1, %v650_v42 }
  0xa2   : > { %564 = vmatprep.mubr.f32.mxu0 %v1667_v3 }
  0xa5   : > { %1230 = vmatmul.mubr.msk.f32.gmra.mrb[2].mxu0 %vm457_vm8, %v374_v57 }
  0xa6   : > { %570 = vmatprep.mubr.f32.mxu0 %v1667_v3 }
  0xa7   : > { %v400_v5 = vpop.permute.xlu1 %399 }
  0xa9   : > { %1231 = vmatmul.mubr.msk.f32.gmra.mrb[4].mxu0 %vm457_vm8, %v375_v58 }
  0xaa   : > { %576 = vmatprep.mubr.f32.mxu0 %v1667_v3 }
  0xab   : > { %v420_v8 = vpop.permute.xlu1 %419  ;;  %v405_v11 = vpop.permute.xlu0 %404 }
  0xad   : > { %1232 = vmatmul.mubr.msk.f32.gmra.mrb[6].mxu0 %vm457_vm8, %v376_v59 }
  0xae   : > { %582 = vmatprep.mubr.f32.mxu0 %v1667_v3 }
  0xaf   : > { %v425_v14 = vpop.permute.xlu1 %424  ;;  %v440_v15 = vpop.permute.xlu0 %439 }
  0xb1   : > { %1233 = vmatmul.mubr.msk.f32.gmra.mrb[8].mxu0 %vm457_vm8, %v377_v60 }
  0xb2   : > { %588 = vmatprep.mubr.f32.mxu0 %v1667_v3 }
  0xb3   : > { %v445_v18 = vpop.permute.xlu1 %444 }
  0xb5   : > { %1234 = vmatmul.mubr.msk.f32.gmra.mrb[10].mxu0 %vm457_vm8, %v378_v61  ;;  %v652_v61 = vrot.slane %v647_v55, %v651_v52 }
  0xb6   : > { %594 = vmatprep.mubr.f32.mxu0 %v1667_v3 }
  0xb7   : > { %v415_v33 = vpop.permute.xlu1 %414 }
  0xb9   : > { %1235 = vmatmul.mubr.msk.f32.gmra.mrb[12].mxu0 %vm457_vm8, %v379_v62 }
  0xba   : > { %600 = vmatprep.mubr.f32.mxu0 %v1667_v3 }
  0xbb   : > { %v435_v46 = vpop.permute.xlu1 %434 }
  0xbd   : > { %1236 = vmatmul.mubr.msk.f32.gmra.mrb[14].mxu0 %vm457_vm8, %v380_v63 }
  0xbe   : > { %606 = vmatprep.mubr.f32.mxu0 %v1667_v3 }
  0xc1   : > { %1237 = vmatmul.mubr.msk.f32.gmra.mrb[16].mxu0 %vm457_vm8, %v381_v0  ;;  %v656_v0 = vrot.slane %v647_v55, %v655_v56 }
  0xc2   : > { %612 = vmatprep.mubr.f32.mxu0 %v1667_v3 }
  0xc5   : > { %1238 = vmatmul.mubr.msk.f32.gmra.mrb[18].mxu0 %vm457_vm8, %v382_v1 }
  0xc6   : > { %618 = vmatprep.mubr.f32.mxu0 %v1667_v3 }
  0xc9   : > { %1239 = vmatmul.mubr.msk.f32.gmra.mrb[20].mxu0 %vm457_vm8, %v383_v2 }
  0xca   : > { %624 = vmatprep.mubr.f32.mxu0 %v1667_v3 }
  0xcd   : > { %1240 = vmatmul.mubr.msk.f32.gmra.mrb[22].mxu0 %vm457_vm8, %v384_v4 }
  0xce   : > { %1095 = vmatprep.mubr.f32.mxu0 %v1667_v3  ;;  %v410_v3 = vpop.permute.xlu0 %409 }
  0xd2   : > { %v430_v35 = vpop.permute.xlu0 %429 }
 0x174   : > { %v560_v6 = vpop.f32.mrb[0].mxu0 }
 0x175   : > { %v562_v7 = vpop.f32.mrb[1].mxu0  ;;  %v561_v20 = vadd.f32 %v560_v6, %v400_v5 }
 0x176   : > { %v563_v23 = vadd.f32 %v562_v7, %v400_v5 }
 0x178   : > { %v566_v9 = vpop.f32.mrb[2].mxu0 }
 0x179   : > { %v568_v10 = vpop.f32.mrb[3].mxu0  ;;  %v567_v28 = vadd.f32 %v566_v9, %v405_v11 }
 0x17a   : > { %v569_v32 = vadd.f32 %v568_v10, %v405_v11  ;;  %v450_v11 = vpop.permute.xlu0 %449 }
 0x17c   : > { %v572_v12 = vpop.f32.mrb[4].mxu0 }
 0x17d   : > { %v574_v13 = vpop.f32.mrb[5].mxu0  ;;  %v573_v39 = vadd.f32 %v572_v12, %v410_v3 }
 0x17e   : > { %v575_v43 = vadd.f32 %v574_v13, %v410_v3 }
 0x180   : > { %v578_v16 = vpop.f32.mrb[6].mxu0 }
 0x181   : > { %v580_v17 = vpop.f32.mrb[7].mxu0  ;;  %v579_v49 = vadd.f32 %v578_v16, %v415_v33 }
 0x182   : > { %v581_v53 = vadd.f32 %v580_v17, %v415_v33 }
 0x184   : > { %v584_v19 = vpop.f32.mrb[8].mxu0 }
 0x185   : > { %v585_v21 = vadd.f32 %v584_v19, %v420_v8  ;;  %v586_v22 = vpop.f32.mrb[9].mxu0 }
 0x186   : > { %v587_v24 = vadd.f32 %v586_v22, %v420_v8  ;;  %v455_v22 = vpop.permute.xlu1 %454 }
 0x187   : > { %v631_v25 = vmul.f32 %v585_v21, %v561_v20 }
 0x188   : > { %v632_v26 = vmul.f32 %v587_v24, %v563_v23  ;;  %v590_v27 = vpop.f32.mrb[10].mxu0 }
 0x189   : > { %v591_v29 = vadd.f32 %v590_v27, %v425_v14  ;;  %v592_v30 = vpop.f32.mrb[11].mxu0 }
 0x18a   : > { %v593_v34 = vadd.f32 %v592_v30, %v425_v14 }
 0x18b   : > { %v633_v36 = vmul.f32 %v591_v29, %v567_v28 }
 0x18c   : > { %v634_v37 = vmul.f32 %v593_v34, %v569_v32  ;;  %v596_v38 = vpop.f32.mrb[12].mxu0 }
 0x18d   : > { %v597_v40 = vadd.f32 %v596_v38, %v430_v35  ;;  %v598_v41 = vpop.f32.mrb[13].mxu0 }
 0x18e   : > { %v599_v44 = vadd.f32 %v598_v41, %v430_v35 }
 0x18f   : > { %v635_v45 = vmul.f32 %v597_v40, %v573_v39 }
 0x190   : > { %v636_v47 = vmul.f32 %v599_v44, %v575_v43  ;;  %v602_v48 = vpop.f32.mrb[14].mxu0 }
 0x191   : > { %v603_v50 = vadd.f32 %v602_v48, %v435_v46  ;;  %v604_v51 = vpop.f32.mrb[15].mxu0 }
 0x192   : > { %v605_v54 = vadd.f32 %v604_v51, %v435_v46 }
 0x193   : > { %v637_v57 = vmul.f32 %v603_v50, %v579_v49 }
 0x194   : > { %v638_v58 = vmul.f32 %v605_v54, %v581_v53  ;;  %v608_v59 = vpop.f32.mrb[16].mxu0 }
 0x195   : > { %v609_v60 = vadd.f32 %v608_v59, %v440_v15  ;;  %v610_v62 = vpop.f32.mrb[17].mxu0 }
 0x196   : > { %v611_v63 = vadd.f32 %v610_v62, %v440_v15 }
 0x197   : > { %v639_v1 = vadd.f32 %v631_v25, %v609_v60 }
 0x198   : > { %v640_v2 = vadd.f32 %v632_v26, %v611_v63  ;;  %v614_v4 = vpop.f32.mrb[18].mxu0 }
 0x199   : > { %v659_v5 = vmul.f32 %v652_v61, %v639_v1  ;;  %v615_v6 = vadd.f32 %v614_v4, %v445_v18  ;;  %v616_v7 = vpop.f32.mrb[19].mxu0 }
 0x19a   : > { %v660_v8 = vmul.f32 %v656_v0, %v640_v2  ;;  %v617_v9 = vadd.f32 %v616_v7, %v445_v18 }
 0x19b   : > { %v641_v10 = vadd.f32 %v633_v36, %v615_v6  ;;  %v1942_v6 = vld [vmem:[%s2012_s3] sm:$0x77] }
 0x19c   : > { %v642_v12 = vadd.f32 %v634_v37, %v617_v9  ;;  %v620_v13 = vpop.f32.mrb[20].mxu0  ;;  %v1440_v14 = vpack.i.bf16 %v660_v8, %v659_v5  ;;  %v955_v7 = vcombine.high %v1942_v6, %v1942_v6  ;;  %v947_v8 = vld [vmem:[%s2014_s5] sm:$0x7] }
 0x19d   : > { %v661_v16 = vmul.f32 %v652_v61, %v641_v10  ;;  %v621_v17 = vadd.f32 %v620_v13, %v450_v11  ;;  %v622_v19 = vpop.f32.mrb[21].mxu0 }
 0x19e   : > { %v662_v20 = vmul.f32 %v656_v0, %v642_v12  ;;  %v623_v21 = vadd.f32 %v622_v19, %v450_v11  ;;  %1441 = vrot.lane.b32.xlu0 %v1440_v14, %s1671_s21  ;;  %1024 = vmatprep.mubr.f32.mxu1 %v955_v7 }
 0x19f   : > { %v643_v15 = vadd.f32 %v635_v45, %v621_v17 }
 0x1a0   : > { %v644_v23 = vadd.f32 %v636_v47, %v623_v21  ;;  %v626_v3 = vpop.f32.mrb[22].mxu0  ;;  %v1445_v24 = vpack.i.bf16 %v662_v20, %v661_v16 }
 0x1a1   : > { %v663_v25 = vmul.f32 %v652_v61, %v643_v15  ;;  %v627_v26 = vadd.f32 %v626_v3, %v455_v22  ;;  %v628_v18 = vpop.f32.mrb[23].mxu0 }
 0x1a2   : > { %v664_v27 = vmul.f32 %v656_v0, %v644_v23  ;;  %v629_v28 = vadd.f32 %v628_v18, %v455_v22  ;;  %1446 = vrot.lane.b32.xlu1 %v1445_v24, %s1671_s21 }
 0x1a3   : > { %v645_v29 = vadd.f32 %v637_v57, %v627_v26 }
 0x1a4   : > { %v646_v30 = vadd.f32 %v638_v58, %v629_v28  ;;  %v1450_v31 = vpack.i.bf16 %v664_v27, %v663_v25 }
 0x1a5   : > { %v665_v32 = vmul.f32 %v652_v61, %v645_v29 }
 0x1a6   : > { %v666_v33 = vmul.f32 %v656_v0, %v646_v30  ;;  %1451 = vrot.lane.b32.xlu0 %v1450_v31, %s1671_s21 }
 0x1a8   : > { %v1455_v34 = vpack.i.bf16 %v666_v33, %v665_v32 }
 0x1aa   : > { %1456 = vrot.lane.b32.xlu1 %v1455_v34, %s1671_s21 }
 0x210   : > { %v1442_v35 = vpop.permute.xlu0 %1441 }
 0x211   : > { %v1444_v36 = vunpack.i.h.bf16 %v1442_v35  ;;  %v1443_v37 = vunpack.i.l.bf16 %v1442_v35 }
 0x213   : > { %v692_v38 = vsel %vm691_vm9, %v1443_v37, %v1444_v36  ;;  %v704_v39 = vsel %vm691_vm9, 0.0, %v1443_v37 }
 0x214   : > { %v709_v40 = vsel %vm708_vm10, %v692_v38, 0.0  ;;  %v1447_v41 = vpop.permute.xlu1 %1446 }
 0x215   : > { %v1449_v42 = vunpack.i.h.bf16 %v1447_v41  ;;  %v1448_v43 = vunpack.i.l.bf16 %v1447_v41  ;;  %v1460_v44 = vpack.i.bf16 %v709_v40, %v704_v39 }
 0x217   : > { %v705_v46 = vsel %vm691_vm9, 0.0, %v1448_v43  ;;  %1461 = vrot.lane.b32.xlu0 %v1460_v44, %s1661_s11  ;;  %v693_v47 = vsel %vm691_vm9, %v1448_v43, %v1449_v42  ;;  %v1275_v55 = vpack.c.bf16 %v1448_v43, %v1443_v37 }
 0x218   : > { %v1452_v49 = vpop.permute.xlu0 %1451  ;;  %v710_v50 = vsel %vm708_vm10, %v693_v47, 0.0  ;;  %v1272_v51 = vpack.c.bf16 %v693_v47, %v692_v38 }
 0x219   : > { %v1454_v52 = vunpack.i.h.bf16 %v1452_v49  ;;  %v1453_v53 = vunpack.i.l.bf16 %v1452_v49  ;;  %v1470_v54 = vpack.i.bf16 %v710_v50, %v705_v46 }
 0x21a   : > { %1274 = vmatprep.subr.msk.bf16.mxu1 %vm1885_vm12, %v1272_v51 }
 0x21b   : > { %v694_v56 = vsel %vm691_vm9, %v1453_v53, %v1454_v52  ;;  %v706_v57 = vsel %vm691_vm9, 0.0, %v1453_v53  ;;  %1471 = vrot.lane.b32.xlu1 %v1470_v54, %s1661_s11  ;;  %1277 = vmatpush1.bf16.msk.msra.mxu1 %vm1276_vm13, %v1275_v55 }
 0x21c   : > { %v711_v58 = vsel %vm708_vm10, %v694_v56, 0.0  ;;  %1466 = vrot.lane.b32.xlu0 %v1460_v44, %s1663_s13  ;;  %v1457_v59 = vpop.permute.xlu1 %1456 }
 0x21d   : > { %v1459_v60 = vunpack.i.h.bf16 %v1457_v59  ;;  %v1458_v61 = vunpack.i.l.bf16 %v1457_v59  ;;  %v1480_v62 = vpack.i.bf16 %v711_v58, %v706_v57 }
 0x21f   : > { %v695_v63 = vsel %vm691_vm9, %v1458_v61, %v1459_v60  ;;  %v707_v0 = vsel %vm691_vm9, 0.0, %v1458_v61  ;;  %1476 = vrot.lane.b32.xlu1 %v1470_v54, %s1663_s13  ;;  %v1281_v4 = vpack.c.bf16 %v1458_v61, %v1453_v53 }
 0x220   : > { %v712_v1 = vsel %vm708_vm10, %v695_v63, 0.0  ;;  %v1278_v2 = vpack.c.bf16 %v695_v63, %v694_v56  ;;  %1481 = vrot.lane.b32.xlu0 %v1480_v62, %s1661_s11 }
 0x221   : > { %v1495_v5 = vpack.i.bf16 %v712_v1, %v707_v0 }
 0x222   : > { %1280 = vmatprep.subr.msk.bf16.mxu1 %vm1885_vm12, %v1278_v2 }
 0x223   : > { %1496 = vrot.lane.b32.xlu1 %v1495_v5, %s1661_s11  ;;  %1283 = vmatpush1.bf16.msk.msra.mxu1 %vm1276_vm13, %v1281_v4  ;;  %s2025_s11 = smov 90  }
 0x224   : > { %1486 = vrot.lane.b32.xlu0 %v1460_v44, %s1662_s12 }
 0x227   : > { %1501 = vrot.lane.b32.xlu1 %v1470_v54, %s1662_s12 }
 0x228   : > { %1491 = vrot.lane.b32.xlu0 %v1480_v62, %s1663_s13 }
 0x22b   : > { %1516 = vrot.lane.b32.xlu1 %v1495_v5, %s1663_s13 }
 0x22c   : > { %1506 = vrot.lane.b32.xlu0 %v1480_v62, %s1662_s12 }
 0x22f   : > { %1521 = vrot.lane.b32.xlu1 %v1470_v54, %s1664_s14 }
 0x230   : > { %1511 = vrot.lane.b32.xlu0 %v1460_v44, %s1664_s14 }
 0x233   : > { %1536 = vrot.lane.b32.xlu1 %v1495_v5, %s1662_s12 }
 0x234   : > { %1526 = vrot.lane.b32.xlu0 %v1480_v62, %s1664_s14 }
 0x237   : > { %1541 = vrot.lane.b32.xlu1 %v1470_v54, %s1665_s15 }
 0x238   : > { %1531 = vrot.lane.b32.xlu0 %v1460_v44, %s1665_s15 }
 0x23b   : > { %1556 = vrot.lane.b32.xlu1 %v1495_v5, %s1664_s14 }
 0x23c   : > { %1546 = vrot.lane.b32.xlu0 %v1480_v62, %s1665_s15 }
 0x23f   : > { %1561 = vrot.lane.b32.xlu1 %v1470_v54, %s1666_s16 }
 0x240   : > { %1551 = vrot.lane.b32.xlu0 %v1460_v44, %s1666_s16 }
 0x243   : > { %1576 = vrot.lane.b32.xlu1 %v1495_v5, %s1665_s15 }
 0x244   : > { %1566 = vrot.lane.b32.xlu0 %v1480_v62, %s1666_s16 }
 0x247   : > { %1581 = vrot.lane.b32.xlu1 %v1470_v54, %s2024_s29 }
 0x248   : > { %1571 = vrot.lane.b32.xlu0 %v1460_v44, %s2024_s29 }
 0x24b   : > { %1591 = vrot.lane.b32.xlu1 %v1495_v5, %s1666_s16 }
 0x24c   : > { %1586 = vrot.lane.b32.xlu0 %v1460_v44, %s2025_s11 }
 0x24f   : > { %1596 = vrot.lane.b32.xlu1 %v1470_v54, %s2025_s11 }
 0x250   : > { %1601 = vrot.lane.b32.xlu0 %v1480_v62, %s2024_s29 }
 0x253   : > { %1611 = vrot.lane.b32.xlu1 %v1495_v5, %s2024_s29 }
 0x254   : > { %1606 = vrot.lane.b32.xlu0 %v1480_v62, %s2025_s11 }
 0x257   : > { %1616 = vrot.lane.b32.xlu1 %v1495_v5, %s2025_s11 }
 0x258   : > { %950 = vperm.xlu0 %1439, %v947_v8  }
 0x289   : > { %v1462_v9 = vpop.permute.xlu0 %1461 }
 0x28a   : > { %v1464_v10 = vunpack.i.h.bf16 %v1462_v9  ;;  %v1463_v11 = vunpack.i.l.bf16 %v1462_v9 }
 0x28c   : > { %v737_v19 = vsel %vm313_vm0, %v1463_v11, %v1464_v10 }
 0x28d   : > { %v1472_v12 = vpop.permute.xlu1 %1471 }
 0x28e   : > { %v1474_v13 = vunpack.i.h.bf16 %v1472_v12  ;;  %v1473_v14 = vunpack.i.l.bf16 %v1472_v12  ;;  %v1467_v16 = vpop.permute.xlu0 %1466 }
 0x28f   : > { %v1469_v29 = vunpack.i.h.bf16 %v1467_v16  ;;  %v1468_v30 = vunpack.i.l.bf16 %v1467_v16 }
 0x290   : > { %v1284_v17 = vpack.c.bf16 %v1474_v13, %v1464_v10  ;;  %v738_v20 = vsel %vm313_vm0, %v1473_v14, %v1474_v13 }
 0x291   : > { %v1477_v21 = vpop.permute.xlu1 %1476  ;;  %v1286_v15 = vpack.c.bf16 %v738_v20, %v737_v19  ;;  %v765_v41 = vsel %vm321_vm2, %v1468_v30, %v1469_v29 }
 0x292   : > { %v1482_v22 = vpop.permute.xlu0 %1481  ;;  %1285 = vmatprep.subr.bf16.mxu1 %v1284_v17  ;;  %v1479_v25 = vunpack.i.h.bf16 %v1477_v21  ;;  %v1478_v26 = vunpack.i.l.bf16 %v1477_v21 }
 0x293   : > { %1287 = vmatpush1.bf16.msra.mxu1 %v1286_v15  ;;  %v1484_v23 = vunpack.i.h.bf16 %v1482_v22  ;;  %v1483_v3 = vunpack.i.l.bf16 %v1482_v22 }
 0x294   : > { %v1292_v36 = vpack.c.bf16 %v1479_v25, %v1469_v29  ;;  %v766_v38 = vsel %vm321_vm2, %v1478_v26, %v1479_v25 }
 0x295   : > { %v1497_v24 = vpop.permute.xlu1 %1496  ;;  %v739_v32 = vsel %vm313_vm0, %v1483_v3, %v1484_v23  ;;  %v1294_v43 = vpack.c.bf16 %v766_v38, %v765_v41 }
 0x296   : > { %v1499_v18 = vunpack.i.h.bf16 %v1497_v24  ;;  %v1498_v27 = vunpack.i.l.bf16 %v1497_v24  ;;  %v1487_v28 = vpop.permute.xlu0 %1486 }
 0x297   : > { %v1489_v49 = vunpack.i.h.bf16 %v1487_v28  ;;  %v1488_v50 = vunpack.i.l.bf16 %v1487_v28 }
 0x298   : > { %v1288_v31 = vpack.c.bf16 %v1499_v18, %v1484_v23  ;;  %v740_v33 = vsel %vm313_vm0, %v1498_v27, %v1499_v18  ;;  %vm1107_vm0 = vcmask 129028  }
 0x299   : > { %v1502_v34 = vpop.permute.xlu1 %1501  ;;  %v1290_v35 = vpack.c.bf16 %v740_v33, %v739_v32  ;;  %v793_v61 = vsel %vm329_vm1, %v1488_v50, %v1489_v49 }
 0x29a   : > { %v1492_v37 = vpop.permute.xlu0 %1491  ;;  %1289 = vmatprep.subr.bf16.mxu1 %v1288_v31  ;;  %v1504_v44 = vunpack.i.h.bf16 %v1502_v34  ;;  %v1503_v45 = vunpack.i.l.bf16 %v1502_v34 }
 0x29b   : > { %1291 = vmatpush1.bf16.msra.mxu1 %v1290_v35  ;;  %v1494_v39 = vunpack.i.h.bf16 %v1492_v37  ;;  %v1493_v40 = vunpack.i.l.bf16 %v1492_v37 }
 0x29c   : > { %1293 = vmatprep.subr.bf16.mxu1 %v1292_v36  ;;  %v1300_v56 = vpack.c.bf16 %v1504_v44, %v1489_v49  ;;  %v794_v58 = vsel %vm329_vm1, %v1503_v45, %v1504_v44 }
 0x29d   : > { %v1517_v42 = vpop.permute.xlu1 %1516  ;;  %v767_v52 = vsel %vm321_vm2, %v1493_v40, %v1494_v39  ;;  %v1302_v1 = vpack.c.bf16 %v794_v58, %v793_v61 }
 0x29e   : > { %v1519_v46 = vunpack.i.h.bf16 %v1517_v42  ;;  %v1518_v47 = vunpack.i.l.bf16 %v1517_v42  ;;  %v1507_v48 = vpop.permute.xlu0 %1506 }
 0x29f   : > { %1295 = vmatpush1.bf16.msra.mxu1 %v1294_v43  ;;  %v1509_v59 = vunpack.i.h.bf16 %v1507_v48  ;;  %v1508_v60 = vunpack.i.l.bf16 %v1507_v48 }
 0x2a0   : > { %v1296_v51 = vpack.c.bf16 %v1519_v46, %v1494_v39  ;;  %v768_v53 = vsel %vm321_vm2, %v1518_v47, %v1519_v46 }
 0x2a1   : > { %v1522_v54 = vpop.permute.xlu1 %1521  ;;  %v1298_v55 = vpack.c.bf16 %v768_v53, %v767_v52  ;;  %v795_v10 = vsel %vm329_vm1, %v1508_v60, %v1509_v59 }
 0x2a2   : > { %v1512_v57 = vpop.permute.xlu0 %1511  ;;  %1297 = vmatprep.subr.bf16.mxu1 %v1296_v51  ;;  %v1524_v62 = vunpack.i.h.bf16 %v1522_v54  ;;  %v1523_v63 = vunpack.i.l.bf16 %v1522_v54 }
 0x2a3   : > { %1299 = vmatpush1.bf16.msra.mxu1 %v1298_v55  ;;  %v1514_v2 = vunpack.i.h.bf16 %v1512_v57  ;;  %v1513_v4 = vunpack.i.l.bf16 %v1512_v57 }
 0x2a4   : > { %1301 = vmatprep.subr.bf16.mxu1 %v1300_v56  ;;  %v822_v19 = vsel %vm337_vm3, %v1523_v63, %v1524_v62 }
 0x2a5   : > { %v1537_v0 = vpop.permute.xlu1 %1536  ;;  %v1308_v14 = vpack.c.bf16 %v1524_v62, %v1514_v2  ;;  %v821_v17 = vsel %vm337_vm3, %v1513_v4, %v1514_v2 }
 0x2a6   : > { %v1539_v5 = vunpack.i.h.bf16 %v1537_v0  ;;  %v1538_v7 = vunpack.i.l.bf16 %v1537_v0  ;;  %v1527_v8 = vpop.permute.xlu0 %1526  ;;  %v1310_v3 = vpack.c.bf16 %v822_v19, %v821_v17 }
 0x2a7   : > { %1303 = vmatpush1.bf16.msra.mxu1 %v1302_v1  ;;  %v1529_v20 = vunpack.i.h.bf16 %v1527_v8  ;;  %v1528_v21 = vunpack.i.l.bf16 %v1527_v8 }
 0x2a8   : > { %v1304_v9 = vpack.c.bf16 %v1539_v5, %v1509_v59  ;;  %v796_v11 = vsel %vm329_vm1, %v1538_v7, %v1539_v5  ;;  %vm1108_vm1 = vmor %vm1107_vm0, %vm1106_vm15 }
 0x2a9   : > { %v1542_v12 = vpop.permute.xlu1 %1541  ;;  %v1306_v13 = vpack.c.bf16 %v796_v11, %v795_v10  ;;  %v823_v29 = vsel %vm337_vm3, %v1528_v21, %v1529_v20 }
 0x2aa   : > { %v1532_v16 = vpop.permute.xlu0 %1531  ;;  %1305 = vmatprep.subr.bf16.mxu1 %v1304_v9  ;;  %v1544_v15 = vunpack.i.h.bf16 %v1542_v12  ;;  %v1543_v22 = vunpack.i.l.bf16 %v1542_v12 }
 0x2ab   : > { %1307 = vmatpush1.bf16.msra.mxu1 %v1306_v13  ;;  %v1534_v24 = vunpack.i.h.bf16 %v1532_v16  ;;  %v1533_v25 = vunpack.i.l.bf16 %v1532_v16 }
 0x2ac   : > { %1309 = vmatprep.subr.bf16.mxu1 %v1308_v14  ;;  %v850_v36 = vsel %vm345_vm4, %v1543_v22, %v1544_v15 }
 0x2ad   : > { %v1557_v23 = vpop.permute.xlu1 %1556  ;;  %v1316_v33 = vpack.c.bf16 %v1544_v15, %v1534_v24  ;;  %v849_v35 = vsel %vm345_vm4, %v1533_v25, %v1534_v24 }
 0x2ae   : > { %v1559_v26 = vunpack.i.h.bf16 %v1557_v23  ;;  %v1558_v18 = vunpack.i.l.bf16 %v1557_v23  ;;  %v1547_v27 = vpop.permute.xlu0 %1546  ;;  %v1318_v42 = vpack.c.bf16 %v850_v36, %v849_v35 }
 0x2af   : > { %1311 = vmatpush1.bf16.msra.mxu1 %v1310_v3  ;;  %v1549_v37 = vunpack.i.h.bf16 %v1547_v27  ;;  %v1548_v38 = vunpack.i.l.bf16 %v1547_v27 }
 0x2b0   : > { %v1312_v28 = vpack.c.bf16 %v1559_v26, %v1529_v20  ;;  %v824_v30 = vsel %vm337_vm3, %v1558_v18, %v1559_v26 }
 0x2b1   : > { %v1562_v31 = vpop.permute.xlu1 %1561  ;;  %v1314_v32 = vpack.c.bf16 %v824_v30, %v823_v29  ;;  %v851_v49 = vsel %vm345_vm4, %v1548_v38, %v1549_v37 }
 0x2b2   : > { %v1552_v34 = vpop.permute.xlu0 %1551  ;;  %1313 = vmatprep.subr.bf16.mxu1 %v1312_v28  ;;  %v1564_v39 = vunpack.i.h.bf16 %v1562_v31  ;;  %v1563_v40 = vunpack.i.l.bf16 %v1562_v31 }
 0x2b3   : > { %1315 = vmatpush1.bf16.msra.mxu1 %v1314_v32  ;;  %v1554_v43 = vunpack.i.h.bf16 %v1552_v34  ;;  %v1553_v44 = vunpack.i.l.bf16 %v1552_v34 }
 0x2b4   : > { %1317 = vmatprep.subr.bf16.mxu1 %v1316_v33  ;;  %v878_v56 = vsel %vm353_vm5, %v1563_v40, %v1564_v39 }
 0x2b5   : > { %v1577_v41 = vpop.permute.xlu1 %1576  ;;  %v1324_v53 = vpack.c.bf16 %v1564_v39, %v1554_v43  ;;  %v877_v55 = vsel %vm353_vm5, %v1553_v44, %v1554_v43 }
 0x2b6   : > { %v1579_v45 = vunpack.i.h.bf16 %v1577_v41  ;;  %v1578_v46 = vunpack.i.l.bf16 %v1577_v41  ;;  %v1567_v47 = vpop.permute.xlu0 %1566  ;;  %v1326_v62 = vpack.c.bf16 %v878_v56, %v877_v55 }
 0x2b7   : > { %1319 = vmatpush1.bf16.msra.mxu1 %v1318_v42  ;;  %v1569_v57 = vunpack.i.h.bf16 %v1567_v47  ;;  %v1568_v58 = vunpack.i.l.bf16 %v1567_v47  ;;  %v946_v42 = vld [vmem:[%s2012_s3 + $0x8] sm:$0x7] }
 0x2b8   : > { %v1320_v48 = vpack.c.bf16 %v1579_v45, %v1549_v37  ;;  %v852_v50 = vsel %vm345_vm4, %v1578_v46, %v1579_v45 }
 0x2b9   : > { %v1582_v51 = vpop.permute.xlu1 %1581  ;;  %v1322_v52 = vpack.c.bf16 %v852_v50, %v851_v49  ;;  %v879_v5 = vsel %vm353_vm5, %v1568_v58, %v1569_v57 }
 0x2ba   : > { %v1572_v54 = vpop.permute.xlu0 %1571  ;;  %1321 = vmatprep.subr.bf16.mxu1 %v1320_v48  ;;  %v1584_v59 = vunpack.i.h.bf16 %v1582_v51  ;;  %v1583_v60 = vunpack.i.l.bf16 %v1582_v51 }
 0x2bb   : > { %1323 = vmatpush1.bf16.msra.mxu1 %v1322_v52  ;;  %v1574_v63 = vunpack.i.h.bf16 %v1572_v54  ;;  %v1573_v0 = vunpack.i.l.bf16 %v1572_v54 }
 0x2bc   : > { %1325 = vmatprep.subr.bf16.mxu1 %v1324_v53  ;;  %v906_v13 = vsel %vm361_vm6, %v1583_v60, %v1584_v59 }
 0x2bd   : > { %v1592_v61 = vpop.permute.xlu1 %1591  ;;  %v1332_v14 = vpack.c.bf16 %v1584_v59, %v1574_v63  ;;  %v905_v20 = vsel %vm361_vm6, %v1573_v0, %v1574_v63 }
 0x2be   : > { %v1594_v1 = vunpack.i.h.bf16 %v1592_v61  ;;  %v1593_v2 = vunpack.i.l.bf16 %v1592_v61  ;;  %v1587_v4 = vpop.permute.xlu0 %1586  ;;  %v1334_v26 = vpack.c.bf16 %v906_v13, %v905_v20 }
 0x2bf   : > { %1327 = vmatpush1.bf16.msra.mxu1 %v1326_v62  ;;  %v1589_v8 = vunpack.i.h.bf16 %v1587_v4  ;;  %v1588_v9 = vunpack.i.l.bf16 %v1587_v4 }
 0x2c0   : > { %v1328_v7 = vpack.c.bf16 %v1594_v1, %v1569_v57  ;;  %v880_v10 = vsel %vm353_vm5, %v1593_v2, %v1594_v1 }
 0x2c1   : > { %v1597_v11 = vpop.permute.xlu1 %1596  ;;  %v1330_v12 = vpack.c.bf16 %v880_v10, %v879_v5  ;;  %v933_v22 = vsel %vm369_vm7, %v1588_v9, %v1589_v8 }
 0x2c2   : > { %v1599_v16 = vunpack.i.h.bf16 %v1597_v11  ;;  %v1598_v17 = vunpack.i.l.bf16 %v1597_v11  ;;  %v1602_v19 = vpop.permute.xlu0 %1601  ;;  %1329 = vmatprep.subr.bf16.mxu1 %v1328_v7 }
 0x2c3   : > { %v1604_v21 = vunpack.i.h.bf16 %v1602_v19  ;;  %v1603_v15 = vunpack.i.l.bf16 %v1602_v19  ;;  %1331 = vmatpush1.bf16.msra.mxu1 %v1330_v12 }
 0x2c4   : > { %v934_v23 = vsel %vm369_vm7, %v1598_v17, %v1599_v16  ;;  %v1340_v3 = vpack.c.bf16 %v1599_v16, %v1589_v8  ;;  %1333 = vmatprep.subr.bf16.mxu1 %v1332_v14 }
 0x2c5   : > { %v1342_v24 = vpack.c.bf16 %v934_v23, %v933_v22  ;;  %v1612_v25 = vpop.permute.xlu1 %1611  ;;  %v907_v29 = vsel %vm361_vm6, %v1603_v15, %v1604_v21 }
 0x2c6   : > { %v1614_v18 = vunpack.i.h.bf16 %v1612_v25  ;;  %v1613_v27 = vunpack.i.l.bf16 %v1612_v25  ;;  %v1607_v28 = vpop.permute.xlu0 %1606  ;;  %1341 = vmatprep.subr.bf16.mxu0 %v1340_v3 }
 0x2c7   : > { %1335 = vmatpush1.bf16.msra.mxu1 %v1334_v26  ;;  %1343 = vmatpush1.bf16.msra.mxu0 %v1342_v24  ;;  %v1609_v31 = vunpack.i.h.bf16 %v1607_v28  ;;  %v1608_v32 = vunpack.i.l.bf16 %v1607_v28 }
 0x2c8   : > { %v1336_v30 = vpack.c.bf16 %v1614_v18, %v1604_v21  ;;  %v908_v33 = vsel %vm361_vm6, %v1613_v27, %v1614_v18 }
 0x2c9   : > { %v1617_v34 = vpop.permute.xlu1 %1616  ;;  %v1338_v35 = vpack.c.bf16 %v908_v33, %v907_v29  ;;  %v935_v38 = vsel %vm369_vm7, %v1608_v32, %v1609_v31 }
 0x2ca   : > { %v1619_v36 = vunpack.i.h.bf16 %v1617_v34  ;;  %v1618_v37 = vunpack.i.l.bf16 %v1617_v34  ;;  %1337 = vmatprep.subr.bf16.mxu1 %v1336_v30 }
 0x2cb   : > { %1339 = vmatpush1.bf16.msra.mxu1 %v1338_v35 }
 0x2cc   : > { %v936_v39 = vsel %vm369_vm7, %v1618_v37, %v1619_v36  ;;  %v1344_v40 = vpack.c.bf16 %v1619_v36, %v1609_v31 }
 0x2cd   : > { %v1346_v41 = vpack.c.bf16 %v936_v39, %v935_v38 }
 0x2ce   : > { %1025 = vmatmul.mubr.f32.vlgmr.msra.gmra.mrb[0].mxu1 %v1942_v6  ;;  %1345 = vmatprep.subr.bf16.mxu0 %v1344_v40 }
 0x2cf   : > { %1347 = vmatpush1.bf16.msra.mxu0 %v1346_v41 }
 0x2d2   : > { %1253 = vmatmul.mubr.msk.f32.vlgmr.msra.gmra.mrb[24].mxu0 %vm957_vm14, %v946_v42 }
 0x2d7   : > { %v951_v45 = vpop.permute.xlu0 %950 }
 0x3a1   : > { %v1026_v43 = vpop.f32.mrb[0].mxu1 }
 0x3a2   : > { %v1028_v44 = vpop.f32.mrb[1].mxu1  ;;  %v1027_v46 = vadd.f32 %v1026_v43, %v951_v45 }
 0x3a3   : > { %v1029_v47 = vadd.f32 %v1028_v44, %v951_v45 }
 0x3a5   : > { %v1097_v48 = vpop.f32.mrb[24].mxu0 }
 0x3a6   : > { %v1098_v49 = vadd.f32 %v1097_v48, %v1027_v46  ;;  %v1099_v50 = vpop.f32.mrb[25].mxu0 }
 0x3a7   : > { %v1100_v6 = vadd.f32 %v1099_v50, %v1029_v47 }
 0x3a9   : > { %v1104_v51 = vcombine.low %v1098_v49, %v1100_v6 }
 0x3ab   : > { %1109 = vst.msk [vmem:[%s304_s8] sm:$0x77] %vm1108_vm1, %v1104_v51 }
 0x3ac PF: > { %s16_s25 = sadd.s32 1, %s1659_s25   ;;  %s2026_s21 = smov %s1651_s23 }
 0x3ad   : > { %p13_p7 = scmp.ge.s32.totalorder %s16_s25, 6   ;;  %s2027_s22 = smov %s1655_s24 }
 0x3ae   : > { %s2028_s23 = smov %s2031_s26  ;;  %s2029_s24 = smov %s2035_s27 }
 0x3af   :  { %15 = sbr.rel (!%p13_p7) target bundleno = 3 (0x3), region = 77 }

</bundles_post_ra>
